<compile_context>
chip_gen: v6e
topology: v6e:2x2x1
jax: 0.10.0
libtpu: 0.0.40
codegen_flags: <defaults>
</compile_context>

<pallas_src>
import math
from functools import partial

import jax
import jax.numpy as jnp
from jax import lax
from jax.experimental import pallas as pl
from jax.experimental.pallas import tpu as pltpu

NEG_MAX = -jnp.finfo(jnp.float32).max  # matches -torch.finfo(torch.float).max
_VMEM_LIMIT = 32 * 1024 * 1024         # above v5e's 16 MiB default, < v7x physical


def _pick_tile(dim, target, align=8):
    """Largest tile <= target that divides dim and is `align`-aligned, else dim."""
    if dim <= target:
        return dim
    t = (target // align) * align
    while t >= align:
        if dim % t == 0:
            return t
        t -= align
    return dim


# --------------------------------------------------------------------------
# Flash-style scaled dot-product attention
# --------------------------------------------------------------------------
def _flash_body(q_ref, k_ref, v_ref, mask_ref, o_ref, m_sc, l_sc, acc_sc,
                inv_scale):
    kv_idx = pl.program_id(2)

    @pl.when(kv_idx == 0)
    def _init():
        m_sc[...] = jnp.full_like(m_sc, -jnp.inf)
        l_sc[...] = jnp.zeros_like(l_sc)
        acc_sc[...] = jnp.zeros_like(acc_sc)

    # Scale q (hb*tq*D elements) instead of the (tq, tk) score matrix; keep the
    # operands in their native dtype and accumulate on the MXU in f32.
    q = q_ref[...] * inv_scale                     # (hb, tq, D)
    k = k_ref[...]                                 # (hb, tk, D)
    v = v_ref[...]                                 # (hb, tk, D)

    # Batched QK^T contracting the last dims directly (no k transpose / XLU).
    s = jnp.einsum("hqd,hkd->hqk", q, k,
                   preferred_element_type=jnp.float32)   # (hb, tq, tk)

    if mask_ref is not None:
        s = jnp.where(mask_ref[...] != 0, NEG_MAX, s)

    m_prev = m_sc[...]                                       # (hb, tq, 1)
    m_new = jnp.maximum(m_prev, jnp.max(s, axis=-1, keepdims=True))
    alpha = jnp.exp(m_prev - m_new)
    p = jnp.exp(s - m_new)                                   # unnormalized probs
    l_sc[...] = alpha * l_sc[...] + jnp.sum(p, axis=-1, keepdims=True)
    pv = jnp.einsum("hqk,hkd->hqd", p.astype(v.dtype), v,
                    preferred_element_type=jnp.float32)      # (hb, tq, D)
    acc_sc[...] = alpha * acc_sc[...] + pv
    m_sc[...] = m_new

    @pl.when(kv_idx == pl.num_programs(2) - 1)
    def _finalize():
        # Normalize once on the (tq, D) accumulator; approx reciprocal -> EUP.
        inv_l = pl.reciprocal(l_sc[...], approx=True)
        o_ref[...] = (acc_sc[...] * inv_l).astype(o_ref.dtype)


def _flash_attn_kernel(q_ref, k_ref, v_ref, o_ref, m_sc, l_sc, acc_sc, *,
                       inv_scale):
    _flash_body(q_ref, k_ref, v_ref, None, o_ref, m_sc, l_sc, acc_sc, inv_scale)


def _flash_attn_kernel_masked(q_ref, k_ref, v_ref, mask_ref, o_ref,
                              m_sc, l_sc, acc_sc, *, inv_scale):
    _flash_body(q_ref, k_ref, v_ref, mask_ref, o_ref, m_sc, l_sc, acc_sc,
                inv_scale)


def scale_dot_product_attention(q, k, v, mask=None, *, d_k=None,
                                block_q=256, block_k=256, head_block=None):
    """Pallas equivalent of ScaleDotProductAttention.forward.

    q: (B, H, Sq, D), k/v: (B, H, Sk, D).
    mask: optional (B, 1, Sq, Sk) or (B, H, Sq, Sk) boolean/int array,
    True/nonzero == masked out (matching masked_fill_).
    """
    B, H, Sq, D = q.shape
    Sk = k.shape[2]
    if d_k is None:
        d_k = D
    inv_scale = 1.0 / math.sqrt(float(d_k))

    # q-tiles are a sublane dim (8-aligned); kv-tiles also feed the mask's lane
    # dim so keep them 128-aligned (or full).
    tq = _pick_tile(Sq, block_q, align=8)
    tk = _pick_tile(Sk, block_k, align=128)

    # Heads per grid step: amortize per-step overhead / feed the MXU fatter ops,
    # while keeping the per-step score tile modest.
    if head_block is None:
        head_block = H
        while head_block > 1 and head_block * tq * tk * 4 > (2 << 20):
            head_block //= 2
    hb = max(1, math.gcd(int(head_block), H))     # hb divides H

    BH = B * H
    qf = q.reshape(BH, Sq, D)
    kf = k.reshape(BH, Sk, D)
    vf = v.reshape(BH, Sk, D)

    grid = (BH // hb, Sq // tq, Sk // tk)

    q_spec = pl.BlockSpec((hb, tq, D), lambda i, qi, ki: (i, qi, 0))
    k_spec = pl.BlockSpec((hb, tk, D), lambda i, qi, ki: (i, ki, 0))
    v_spec = pl.BlockSpec((hb, tk, D), lambda i, qi, ki: (i, ki, 0))
    o_spec = pl.BlockSpec((hb, tq, D), lambda i, qi, ki: (i, qi, 0))

    scratch = [pltpu.VMEM((hb, tq, 1), jnp.float32),   # running max m
               pltpu.VMEM((hb, tq, 1), jnp.float32),   # running denom l
               pltpu.VMEM((hb, tq, D), jnp.float32)]   # output accumulator

    cparams = pltpu.CompilerParams(
        dimension_semantics=("parallel", "parallel", "arbitrary"),
        vmem_limit_bytes=_VMEM_LIMIT)

    if mask is None:
        return pl.pallas_call(
            partial(_flash_attn_kernel, inv_scale=inv_scale),
            out_shape=jax.ShapeDtypeStruct((BH, Sq, D), q.dtype),
            grid=grid,
            in_specs=[q_spec, k_spec, v_spec],
            out_specs=o_spec,
            scratch_shapes=scratch,
            compiler_params=cparams,
        )(qf, kf, vf).reshape(B, H, Sq, D)

    if mask.ndim != q.ndim:
        raise ValueError(
            f"mask.dim != attention_weight.dim, mask.dim={mask.ndim}, "
            f"attention_weight.dim={q.ndim}")

    Hm = mask.shape[1]
    if Hm == 1:
        # One (Sq, Sk) mask per batch, shared by every head: reuse the same
        # block across heads via the index_map instead of streaming H copies.
        mf = mask.reshape(B, Sq, Sk).astype(jnp.int32)
        heads_per_batch = H // hb
        m_spec = pl.BlockSpec(
            (1, tq, tk), lambda i, qi, ki: (i // heads_per_batch, qi, ki))
    elif Hm == H:
        mf = mask.reshape(BH, Sq, Sk).astype(jnp.int32)
        m_spec = pl.BlockSpec((hb, tq, tk), lambda i, qi, ki: (i, qi, ki))
    else:
        raise ValueError(f"unsupported mask head dimension {Hm}")

    out = pl.pallas_call(
        partial(_flash_attn_kernel_masked, inv_scale=inv_scale),
        out_shape=jax.ShapeDtypeStruct((BH, Sq, D), q.dtype),
        grid=grid,
        in_specs=[q_spec, k_spec, v_spec, m_spec],
        out_specs=o_spec,
        scratch_shapes=scratch,
        compiler_params=cparams,
    )(qf, kf, vf, mf)
    return out.reshape(B, H, Sq, D)


# --------------------------------------------------------------------------
# Tiled linear (matmul + bias [+ ReLU] [+ residual])
# --------------------------------------------------------------------------
def _linear_kernel(x_ref, w_ref, b_ref, *rest, activation, has_residual):
    if has_residual:
        r_ref, o_ref, acc_ref = rest
    else:
        o_ref, acc_ref = rest
        r_ref = None

    k_idx = pl.program_id(2)

    @pl.when(k_idx == 0)
    def _init():
        acc_ref[...] = jnp.zeros_like(acc_ref)

    acc_ref[...] += jnp.dot(x_ref[...], w_ref[...],
                            preferred_element_type=jnp.float32)

    @pl.when(k_idx == pl.num_programs(2) - 1)
    def _finalize():
        y = acc_ref[...] + b_ref[...].astype(jnp.float32)
        if activation == "relu":
            y = jnp.maximum(y, 0.0)
        if r_ref is not None:
            y = y + r_ref[...].astype(jnp.float32)
        o_ref[...] = y.astype(o_ref.dtype)


def linear(x, w, b, *, activation=None, residual=None,
           block_m=256, block_n=256, block_k=512):
    """y = act(x @ w + b) (+ residual).  x: (..., K), w: (K, N), b: (N,)."""
    orig_shape = x.shape
    K = orig_shape[-1]
    N = w.shape[1]
    xf = x.reshape(-1, K)
    M = xf.shape[0]

    tm = _pick_tile(M, block_m, align=8)
    tn = _pick_tile(N, block_n, align=128)
    tk = _pick_tile(K, block_k, align=128)

    in_specs = [pl.BlockSpec((tm, tk), lambda i, j, k: (i, k)),
                pl.BlockSpec((tk, tn), lambda i, j, k: (k, j)),
                pl.BlockSpec((1, tn), lambda i, j, k: (0, j))]
    args = [xf, w, b.reshape(1, N)]
    if residual is not None:
        in_specs.append(pl.BlockSpec((tm, tn), lambda i, j, k: (i, j)))
        args.append(residual.reshape(M, N))

    out = pl.pallas_call(
        partial(_linear_kernel, activation=activation,
                has_residual=residual is not None),
        out_shape=jax.ShapeDtypeStruct((M, N), x.dtype),
        grid=(M // tm, N // tn, K // tk),
        in_specs=in_specs,
        out_specs=pl.BlockSpec((tm, tn), lambda i, j, k: (i, j)),
        scratch_shapes=[pltpu.VMEM((tm, tn), jnp.float32)],
        compiler_params=pltpu.CompilerParams(
            dimension_semantics=("parallel", "parallel", "arbitrary"),
            vmem_limit_bytes=_VMEM_LIMIT),
    )(*args)
    return out.reshape(orig_shape[:-1] + (N,))


# --------------------------------------------------------------------------
# LayerNorm
# --------------------------------------------------------------------------
def _layer_norm_kernel(x_ref, g_ref, b_ref, o_ref, *, eps):
    x = x_ref[...].astype(jnp.float32)                       # (tm, d)
    mean = jnp.mean(x, axis=-1, keepdims=True)
    xc = x - mean
    var = jnp.mean(xc * xc, axis=-1, keepdims=True)
    y = xc * lax.rsqrt(var + eps)
    y = y * g_ref[...].astype(jnp.float32) + b_ref[...].astype(jnp.float32)
    o_ref[...] = y.astype(o_ref.dtype)


def layer_norm(x, gamma, beta, *, eps):
    orig_shape = x.shape
    d = orig_shape[-1]
    xf = x.reshape(-1, d)
    M = xf.shape[0]
    tm = _pick_tile(M, 256, align=8)
    out = pl.pallas_call(
        partial(_layer_norm_kernel, eps=float(eps)),
        out_shape=jax.ShapeDtypeStruct((M, d), x.dtype),
        grid=(M // tm,),
        in_specs=[pl.BlockSpec((tm, d), lambda i: (i, 0)),
                  pl.BlockSpec((1, d), lambda i: (0, 0)),
                  pl.BlockSpec((1, d), lambda i: (0, 0))],
        out_specs=pl.BlockSpec((tm, d), lambda i: (i, 0)),
        compiler_params=pltpu.CompilerParams(
            dimension_semantics=("parallel",),
            vmem_limit_bytes=_VMEM_LIMIT),
    )(xf, gamma.reshape(1, d), beta.reshape(1, d))
    return out.reshape(orig_shape)


# --------------------------------------------------------------------------
# MultiHeadAttention / FFN / TransformerDecoderLayer
# --------------------------------------------------------------------------
def multi_head_attention(x, memory, params, mask=None, residual=None):
    """MultiHeadAttention.forward (with the output projection fused with the
    residual add of the enclosing decoder block when `residual` is given)."""
    B, Sq, d_model = x.shape
    Sk = memory.shape[1]
    H = params["heads"]
    d_k = d_model // H

    q = linear(x, params["wq"], params["bq"])
    k = linear(memory, params["wk"], params["bk"])
    v = linear(memory, params["wv"], params["bv"])

    # split: (B, S, d_model) -> (B, H, S, d_k)
    q = q.reshape(B, Sq, H, d_k).transpose(0, 2, 1, 3)
    k = k.reshape(B, Sk, H, d_k).transpose(0, 2, 1, 3)
    v = v.reshape(B, Sk, H, d_k).transpose(0, 2, 1, 3)

    # PyTorch repeats the (B, Sq, Sk) mask over heads; we keep one copy and let
    # the kernel's index_map reuse it for every head (same semantics, 1/H bytes)
    mask4 = None if mask is None else mask.reshape(B, 1, Sq, Sk)

    attn = scale_dot_product_attention(q, k, v, mask4, d_k=d_k)  # (B,H,Sq,d_k)

    # combine: (B, H, Sq, d_k) -> (B, Sq, d_model)
    attn = attn.transpose(0, 2, 1, 3).reshape(B, Sq, d_model)
    return linear(attn, params["wo"], params["bo"], residual=residual)


def ffn(x, params, residual=None):
    h = linear(x, params["w1"], params["b1"], activation="relu")
    return linear(h, params["w2"], params["b2"], residual=residual)


def transformer_decoder_layer(tgt, src, mask_src_tgt, mask_self, params):
    eps = params["layer_norm_eps"]
    # self-attention block + residual
    h = layer_norm(tgt, params["ln_self_g"], params["ln_self_b"], eps=eps)
    tgt = multi_head_attention(h, h, params["self_attn"], mask=mask_self,
                               residual=tgt)
    # src-tgt cross-attention block + residual (q from normed tgt, k/v from src)
    h = layer_norm(tgt, params["ln_st_g"], params["ln_st_b"], eps=eps)
    x = multi_head_attention(h, src, params["src_tgt_attn"], mask=mask_src_tgt,
                             residual=tgt)
    # feed-forward block + residual
    h = layer_norm(x, params["ln_ffn_g"], params["ln_ffn_b"], eps=eps)
    return ffn(h, params["ffn"], residual=x)


# --------------------------------------------------------------------------
# Pure-JAX reference (mirrors the PyTorch module exactly)
# --------------------------------------------------------------------------
def _ref_layer_norm(x, g, b, eps):
    mean = jnp.mean(x, axis=-1, keepdims=True)
    var = jnp.mean((x - mean) ** 2, axis=-1, keepdims=True)
    return (x - mean) / jnp.sqrt(var + eps) * g + b


def _ref_mha(x, memory, p, mask):
    B, Sq, dm = x.shape
    Sk = memory.shape[1]
    H = p["heads"]
    dk = dm // H
    q = (x @ p["wq"] + p["bq"]).reshape(B, Sq, H, dk).transpose(0, 2, 1, 3)
    k = (memory @ p["wk"] + p["bk"]).reshape(B, Sk, H, dk).transpose(0, 2, 1, 3)
    v = (memory @ p["wv"] + p["bv"]).reshape(B, Sk, H, dk).transpose(0, 2, 1, 3)
    s = jnp.einsum("bhqd,bhkd->bhqk", q, k) / math.sqrt(dk)
    if mask is not None:
        s = jnp.where(mask[:, None, :, :], NEG_MAX, s)
    a = jax.nn.softmax(s, axis=-1)
    o = jnp.einsum("bhqk,bhkd->bhqd", a, v)
    o = o.transpose(0, 2, 1, 3).reshape(B, Sq, dm)
    return o @ p["wo"] + p["bo"]


def _ref_decoder_layer(tgt, src, mask_src_tgt, mask_self, params):
    eps = params["layer_norm_eps"]
    h = _ref_layer_norm(tgt, params["ln_self_g"], params["ln_self_b"], eps)
    tgt = _ref_mha(h, h, params["self_attn"], mask_self) + tgt
    h = _ref_layer_norm(tgt, params["ln_st_g"], params["ln_st_b"], eps)
    x = _ref_mha(h, src, params["src_tgt_attn"], mask_src_tgt) + tgt
    h = _ref_layer_norm(x, params["ln_ffn_g"], params["ln_ffn_b"], eps)
    f = jnp.maximum(h @ params["ffn"]["w1"] + params["ffn"]["b1"], 0.0)
    f = f @ params["ffn"]["w2"] + params["ffn"]["b2"]
    return f + x


# --------------------------------------------------------------------------
if __name__ == "__main__":
    B = 2
    S_TGT, S_SRC = 8, 16
    D_MODEL, D_FF, HEADS = 32, 64, 4
    LAYER_NORM_EPS = 1e-5

    root = jax.random.PRNGKey(0)
    k_data, k_self, k_st, k_ffn, k_ln = jax.random.split(root, 5)

    def linear_init(key, fan_in, fan_out):
        kw, kb = jax.random.split(key)
        bound = 1.0 / math.sqrt(fan_in)
        w = jax.random.uniform(kw, (fan_in, fan_out), jnp.float32, -bound, bound)
        bb = jax.random.uniform(kb, (fan_out,), jnp.float32, -bound, bound)
        return w, bb

    def mha_init(key):
        kq, kk, kv, ko = jax.random.split(key, 4)
        wq, bq = linear_init(kq, D_MODEL, D_MODEL)
        wk, bk = linear_init(kk, D_MODEL, D_MODEL)
        wv, bv = linear_init(kv, D_MODEL, D_MODEL)
        wo, bo = linear_init(ko, D_MODEL, D_MODEL)
        return dict(heads=HEADS, wq=wq, bq=bq, wk=wk, bk=bk, wv=wv, bv=bv,
                    wo=wo, bo=bo)

    k_w1, k_w2 = jax.random.split(k_ffn)
    w1, b1 = linear_init(k_w1, D_MODEL, D_FF)
    w2, b2 = linear_init(k_w2, D_FF, D_MODEL)

    ln_keys = jax.random.split(k_ln, 6)

    def ln_init(kg, kb):
        g = 1.0 + 0.1 * jax.random.normal(kg, (D_MODEL,), jnp.float32)
        bb = 0.1 * jax.random.normal(kb, (D_MODEL,), jnp.float32)
        return g, bb

    ln_self_g, ln_self_b = ln_init(ln_keys[0], ln_keys[1])
    ln_st_g, ln_st_b = ln_init(ln_keys[2], ln_keys[3])
    ln_ffn_g, ln_ffn_b = ln_init(ln_keys[4], ln_keys[5])

    params = dict(
        layer_norm_eps=LAYER_NORM_EPS,
        self_attn=mha_init(k_self),
        src_tgt_attn=mha_init(k_st),
        ffn=dict(w1=w1, b1=b1, w2=w2, b2=b2),
        ln_self_g=ln_self_g, ln_self_b=ln_self_b,
        ln_st_g=ln_st_g, ln_st_b=ln_st_b,
        ln_ffn_g=ln_ffn_g, ln_ffn_b=ln_ffn_b,
    )

    kt, ks = jax.random.split(k_data)
    tgt = jax.random.normal(kt, (B, S_TGT, D_MODEL), jnp.float32)
    src = jax.random.normal(ks, (B, S_SRC, D_MODEL), jnp.float32)

    # masks: True == masked out (matches torch masked_fill_ semantics)
    causal = jnp.triu(jnp.ones((S_TGT, S_TGT), dtype=jnp.bool_), k=1)
    mask_self = jnp.broadcast_to(causal[None, :, :], (B, S_TGT, S_TGT))
    src_len = jnp.array([S_SRC, S_SRC - 4])
    key_pad = jnp.arange(S_SRC)[None, :] >= src_len[:, None]        # (B, S_SRC)
    mask_src_tgt = jnp.broadcast_to(key_pad[:, None, :], (B, S_TGT, S_SRC))

    out = transformer_decoder_layer(tgt, src, mask_src_tgt, mask_self, params)
    out = jax.block_until_ready(out)

    ref = _ref_decoder_layer(tgt, src, mask_src_tgt, mask_self, params)
    assert out.shape == ref.shape
    # tolerance covers the EUP approximate reciprocal used for softmax norm
    assert jnp.allclose(out, ref, atol=1e-2, rtol=1e-2), \
        float(jnp.max(jnp.abs(out - ref)))

    print("KERNEL_OK")
</pallas_src>

<mosaic_0001>
module attributes {stable_mosaic.version = 11 : i64} {
  func.func @_layer_norm_kernel(%arg0: i32, %arg1: memref<16x32xf32, #tpu.memory_space<vmem>>, %arg2: memref<1x32xf32, #tpu.memory_space<vmem>>, %arg3: memref<1x32xf32, #tpu.memory_space<vmem>>, %arg4: memref<16x32xf32, #tpu.memory_space<vmem>>) attributes {dimension_semantics = [#tpu.dimension_semantics<parallel>], iteration_bounds = array<i64: 1>, scalar_prefetch = 0 : i64, scratch_operands = 0 : i64, tpu.core_type = #tpu.core_type<tc>, window_params = [{transform_indices = @transform_0, window_bounds = array<i64: 16, 32>}, {pipeline_mode = #tpu.pipeline_mode<synchronous>, transform_indices = @transform_1, window_bounds = array<i64: 1, 32>}, {pipeline_mode = #tpu.pipeline_mode<synchronous>, transform_indices = @transform_2, window_bounds = array<i64: 1, 32>}, {transform_indices = @transform_3, window_bounds = array<i64: 16, 32>}]} {
    %c0 = arith.constant 0 : index
    %c0_0 = arith.constant 0 : index
    %0 = vector.load %arg1[%c0, %c0_0] : memref<16x32xf32, #tpu.memory_space<vmem>>, vector<16x32xf32>
    %cst = arith.constant dense<0.000000e+00> : vector<16xf32>
    %1 = vector.multi_reduction <add>, %0, %cst [1] : vector<16x32xf32> to vector<16xf32>
    %2 = vector.shape_cast %1 : vector<16xf32> to vector<16x1xf32>
    %cst_1 = arith.constant 3.200000e+01 : f32
    %3 = vector.broadcast %cst_1 : f32 to vector<16x1xf32>
    %4 = arith.divf %2, %3 : vector<16x1xf32>
    %5 = vector.broadcast %4 : vector<16x1xf32> to vector<16x32xf32>
    %6 = arith.subf %0, %5 : vector<16x32xf32>
    %7 = arith.mulf %6, %6 : vector<16x32xf32>
    %cst_2 = arith.constant dense<0.000000e+00> : vector<16xf32>
    %8 = vector.multi_reduction <add>, %7, %cst_2 [1] : vector<16x32xf32> to vector<16xf32>
    %9 = vector.shape_cast %8 : vector<16xf32> to vector<16x1xf32>
    %cst_3 = arith.constant 3.200000e+01 : f32
    %10 = vector.broadcast %cst_3 : f32 to vector<16x1xf32>
    %11 = arith.divf %9, %10 : vector<16x1xf32>
    %cst_4 = arith.constant 9.99999974E-6 : f32
    %12 = vector.broadcast %cst_4 : f32 to vector<16x1xf32>
    %13 = arith.addf %11, %12 : vector<16x1xf32>
    %14 = math.rsqrt %13 : vector<16x1xf32>
    %15 = vector.broadcast %14 : vector<16x1xf32> to vector<16x32xf32>
    %16 = arith.mulf %6, %15 : vector<16x32xf32>
    %c0_5 = arith.constant 0 : index
    %c0_6 = arith.constant 0 : index
    %17 = vector.load %arg2[%c0_5, %c0_6] : memref<1x32xf32, #tpu.memory_space<vmem>>, vector<1x32xf32>
    %18 = vector.broadcast %17 : vector<1x32xf32> to vector<16x32xf32>
    %19 = arith.mulf %16, %18 : vector<16x32xf32>
    %c0_7 = arith.constant 0 : index
    %c0_8 = arith.constant 0 : index
    %20 = vector.load %arg3[%c0_7, %c0_8] : memref<1x32xf32, #tpu.memory_space<vmem>>, vector<1x32xf32>
    %21 = vector.broadcast %20 : vector<1x32xf32> to vector<16x32xf32>
    %22 = arith.addf %19, %21 : vector<16x32xf32>
    %c0_9 = arith.constant 0 : index
    %c0_10 = arith.constant 0 : index
    %23 = vector.load %arg4[%c0_9, %c0_10] : memref<16x32xf32, #tpu.memory_space<vmem>>, vector<16x32xf32>
    tpu.vector_store %arg4[%c0_9, %c0_10], %22 {strides = array<i32>} : memref<16x32xf32, #tpu.memory_space<vmem>>, vector<16x32xf32>,
    return
  }
  func.func @transform_0(%arg0: i32) -> (i32, i32) {
    %c0_i32 = arith.constant 0 : i32
    %c0_i32_0 = arith.constant 0 : i32
    return %arg0, %c0_i32 : i32, i32
  }
  func.func @transform_1(%arg0: i32) -> (i32, i32) {
    %c0_i32 = arith.constant 0 : i32
    %c0_i32_0 = arith.constant 0 : i32
    %c0_i32_1 = arith.constant 0 : i32
    return %c0_i32, %c0_i32_0 : i32, i32
  }
  func.func @transform_2(%arg0: i32) -> (i32, i32) {
    %c0_i32 = arith.constant 0 : i32
    %c0_i32_0 = arith.constant 0 : i32
    %c0_i32_1 = arith.constant 0 : i32
    return %c0_i32, %c0_i32_0 : i32, i32
  }
  func.func @transform_3(%arg0: i32) -> (i32, i32) {
    %c0_i32 = arith.constant 0 : i32
    %c0_i32_0 = arith.constant 0 : i32
    return %arg0, %c0_i32 : i32, i32
  }
}

</mosaic_0001>

<bundles_post_ra>
// kernel: tpu_custom_call.1
= control target key start
LH: loop header
LB: loop body
LE: loop exit
PB: predicated region body
PF: predicated region fallthrough
CT: control target
= control target key end

     0   :  { %8 = vsyncpa [#allocation3], 0  ;;  %s198_s0 = inlined_call_operand.hbm [shape: f32[16,32], index: 0, kind: input, shape index: {}]   ;;  %s199_s1 = inlined_call_operand.vmem [shape: f32[1,32], index: 1, kind: input, shape index: {}]   ;;  %s200_s2 = inlined_call_operand.vmem [shape: f32[1,32], index: 2, kind: input, shape index: {}]   ;;  %s201_s3 = inlined_call_operand.hbm [shape: f32[16,32], index: 3, kind: output, shape index: {}]  }
   0x1   :  { %9 = vsyncpa [#allocation4], 0  ;;  %s150_s12 = smov [#allocation2]  }
   0x2   :  { %s15_s13 = sshll.u32 %s150_s12, 4  ;;  %s16_s13 = int_to_ptr.vmem [resolvable:$true] %s15_s13 }
   0x3   :  { %s114_s14 = scalar_lea.vmem %s16_s13, 256  ;;  %p119_p1 = scmp.lt.s32.totalorder %s16_s13, %s16_s13 }
   0x4   :  { %p115_p0 = scmp.ne.s32.totalorder %s16_s13, %s114_s14  ;;  %p120_p2 = scmp.lt.s32.totalorder %s114_s14, %s114_s14 }
   0x6   :  { %p121_p3 = por %p120_p2, %p119_p1 }
   0x8   :  { %p122_p4 = pnand %p121_p3, %p115_p0 }
   0xa   :  { %125 = shalt.err (!%p122_p4)
}
   0xb   :  { %s151_s15 = smov 128   ;;  %s152_s16 = smov 8  }
   0xc   :  { %21 = dma.hbm_to_vmem [thread:$0]  %s198_s0, 256, %s16_s13, [#allocation3], %s151_s15, %s151_s15, %s152_s16  }
   0xd   :  { %146 = dma.done.wait [#allocation3], 256  }
   0xe   :  { %147 = vsyncadd [#allocation3], 4294967040  ;;  %vm31_vm0 = vcmask 261120   ;;  %v29_v0 = vld [vmem:[#allocation2] sm:$0xff]  ;;  %v30_v1 = vld [vmem:[#allocation2 + $0x8] sm:$0xff]  ;;  %s153_s22 = smov [#allocation5]  }
   0xf   :  { %v32_v2 = vsel %vm31_vm0, %v29_v0, 0.0  ;;  %v35_v3 = vsel %vm31_vm0, %v30_v1, 0.0  ;;  %v96_v21 = vld [vmem:[%s199_s1] ss:$0 sm:$0xff]  ;;  %s84_s23 = sshll.u32 %s153_s22, 4  ;;  %s85_s23 = int_to_ptr.vmem [resolvable:$true] %s84_s23 }
  0x10   :  { %33 = vadd.xlane.f32.xlu0 %v32_v2  ;;  %v97_v23 = vld [vmem:[%s200_s2] ss:$0 sm:$0xff]  ;;  %s126_s24 = scalar_lea.vmem %s85_s23, 256  ;;  %p131_p6 = scmp.lt.s32.totalorder %s85_s23, %s85_s23 }
  0x11   :  { %p127_p5 = scmp.ne.s32.totalorder %s85_s23, %s126_s24  ;;  %p132_p7 = scmp.lt.s32.totalorder %s126_s24, %s126_s24 }
  0x13   :  { %p133_p8 = por %p132_p7, %p131_p6 }
  0x14   :  { %36 = vadd.xlane.f32.xlu0 %v35_v3 }
  0x15   :  { %p134_p9 = pnand %p133_p8, %p127_p5 }
  0x99   :  { %v34_v4 = vpop.xlane.xlu0 %33 }
  0x9a   :  { %v39_v5 = vmul.f32 0.03125, %v34_v4 }
  0x9c   :  { %v41_v6 = vsub.f32 %v29_v0, %v39_v5 }
  0x9d   :  { %v37_v7 = vpop.xlane.xlu0 %36 }
  0x9e   :  { %v40_v8 = vmul.f32 0.03125, %v37_v7  ;;  %v43_v9 = vmul.f32 %v41_v6, %v41_v6 }
  0xa0   :  { %v42_v10 = vsub.f32 %v30_v1, %v40_v8  ;;  %v45_v11 = vsel %vm31_vm0, %v43_v9, 0.0 }
  0xa1   :  { %46 = vadd.xlane.f32.xlu1 %v45_v11 }
  0xa2   :  { %v44_v12 = vmul.f32 %v42_v10, %v42_v10 }
  0xa4   :  { %v48_v13 = vsel %vm31_vm0, %v44_v12, 0.0 }
  0xa5   :  { %49 = vadd.xlane.f32.xlu1 %v48_v13 }
 0x12a   :  { %v47_v14 = vpop.xlane.xlu1 %46 }
 0x12b   :  { %v51_v15 = vmul.f32 0.03125, %v47_v14 }
 0x12d   :  { %v53_v16 = vadd.f32 1e-05, %v51_v15 }
 0x12e   :  { %v50_v17 = vpop.xlane.xlu1 %49 }
 0x12f   :  { %102 = vrsqrt.f32 %v53_v16  ;;  %v52_v18 = vmul.f32 0.03125, %v50_v17 }
 0x131   :  { %v54_v19 = vadd.f32 1e-05, %v52_v18 }
 0x133   :  { %104 = vrsqrt.f32 %v54_v19 }
 0x13c   :  { %v103_v20 = vpop.eup %102 }
 0x13d   :  { %v57_v22 = vmul.f32 %v103_v20, %v41_v6 }
 0x13f   :  { %v66_v24 = vmul.f32 %v96_v21, %v57_v22 }
 0x140   :  { %v105_v25 = vpop.eup %104 }
 0x141   :  { %v58_v26 = vmul.f32 %v105_v25, %v42_v10  ;;  %v75_v27 = vadd.f32 %v97_v23, %v66_v24 }
 0x143   :  { %v67_v28 = vmul.f32 %v96_v21, %v58_v26  ;;  %77 = vst.msk [vmem:[#allocation5] sm:$0xff] %vm31_vm0, %v75_v27 }
 0x145   :  { %v76_v29 = vadd.f32 %v97_v23, %v67_v28 }
 0x147   :  { %78 = vst.msk [vmem:[#allocation5 + $0x8] sm:$0xff] %vm31_vm0, %v76_v29 }
 0x148   :  { %137 = shalt.err (!%p134_p9)
}
 0x149   :  { %90 = dma.vmem_to_hbm [thread:$0]  %s85_s23, 256, %s201_s3, [#allocation4], %s151_s15, %s151_s15, %s152_s16  }
 0x14a   :  { %148 = dma.done.wait [#allocation4], 256  }
 0x14b   :  { %149 = vsyncadd [#allocation4], 4294967040 }
 0x14c   :  { %94 = vsyncpa [#allocation3], 1 }
 0x14d   :  { %95 = vsyncpa [#allocation4], 1 }

</bundles_post_ra>
